<compile_context>
chip_gen: v5e
topology: v5e:2x2
jax: 0.10.0
libtpu: 0.0.40
codegen_flags: <defaults>
</compile_context>

<pallas_src>
import functools

import jax
import jax.numpy as jnp
from jax.experimental import pallas as pl
from jax.experimental.pallas import tpu as pltpu


def _lvc_kernel(xw_ref, w_ref, wo_ref, bo_ref, res_ref, skip_ref, z_ref, *,
                radix, dilation, padding, offset, steps_per_block,
                dilation_channels, residual_channels, matmul_dtype):
    """One grid point = (batch b, block g of `steps_per_block` LVC steps).

    xw_ref  : (1, 1, C_res, blk_t + 2*padding) f32   windowed (padded) input
    w_ref   : (1, 1, S_blk, 2*dc, radix*C_res) mm-dtype per-step LVC kernels
    wo_ref  : (C_res + C_skip, dc)             f32   1x1 conv weight (resident)
    bo_ref  : (C_res + C_skip, 1)              f32   1x1 conv bias   (resident)
    res_ref : (1, C_res,  blk_t)  output slab, already in (B, C, T) layout
    skip_ref: (1, C_skip, blk_t)
    z_ref   : (2*dc, blk_t) f32 VMEM scratch (pre-gate activations)
    """
    dc = dilation_channels
    blk_t = steps_per_block * offset

    xw = xw_ref[0, 0]                                   # (C_res, win) f32
    xw_mm = xw.astype(matmul_dtype)

    # Stack the radix taps along the contraction (sublane) axis ONCE per block:
    #   xbig[r*C_res + c, t] = xw[c, t + r*dilation],  t in [0, blk_t)
    xbig = jnp.concatenate(
        [xw_mm[:, r * dilation:r * dilation + blk_t] for r in range(radix)],
        axis=0)                                         # (radix*C_res, blk_t)

    # Location-variable conv: weights differ per step, so this is a
    # block-diagonal matmul along time -> one fused-tap MXU dot per step
    # (K = radix*C_res), statically unrolled for LLO scheduling visibility.
    for s in range(steps_per_block):
        z_ref[:, s * offset:(s + 1) * offset] = jnp.dot(
            w_ref[0, 0, s], xbig[:, s * offset:(s + 1) * offset],
            preferred_element_type=jnp.float32)

    # Fused gate + 1x1 conv W_o on the full lane-dense slab (f32 elementwise,
    # bf16 MXU operands, f32 accumulation).
    z = z_ref[...]                                      # (2*dc, blk_t) f32
    gate = jnp.tanh(z[:dc]) * jax.nn.sigmoid(z[dc:])    # fused_gate
    out = jnp.dot(wo_ref[...].astype(matmul_dtype), gate.astype(matmul_dtype),
                  preferred_element_type=jnp.float32) + bo_ref[...]

    # Residual source = center of the window (x itself) -> no separate xr input.
    x_center = xw[:, padding:padding + blk_t]           # (C_res, blk_t) f32
    res_ref[0] = (out[:residual_channels] + x_center).astype(res_ref.dtype)
    skip_ref[0] = out[residual_channels:].astype(skip_ref.dtype)


def _pick_steps_per_block(steps, offset, lane_target=512):
    """Choose steps-per-block so the output lane dim is >= lane_target and
    either 128-aligned or covers the whole time axis."""
    divisors = [d for d in range(1, steps + 1) if steps % d == 0]
    cands = [d for d in divisors if (d * offset) % 128 == 0 or d == steps]
    for d in cands:
        if d * offset >= lane_target:
            return d
    return cands[-1]


def noncausal_layer_lvc(x, weights, wo, bo, *, dilation, radix,
                        steps_per_block=None, matmul_dtype=jnp.bfloat16):
    """x: (B, C_res, T); weights: (B, steps, 2*dc, C_res, radix);
    wo: (C_res + C_skip, dc); bo: (C_res + C_skip,).
    Returns (residual_out (B, C_res, T), skip_out (B, C_skip, T))."""
    batch, c_res, T = x.shape
    _, steps, c_out2, c_res_w, radix_w = weights.shape
    assert c_res_w == c_res and radix_w == radix
    assert T % steps == 0, "T must be divisible by the number of LVC steps"
    assert (dilation * (radix - 1)) % 2 == 0, "padding must be symmetric"
    dc = c_out2 // 2
    offset = T // steps
    padding = dilation * (radix - 1) // 2
    n_out = wo.shape[0]
    skip_ch = n_out - c_res

    if steps_per_block is None:
        steps_per_block = _pick_steps_per_block(steps, offset)
    assert steps % steps_per_block == 0
    nblk = steps // steps_per_block
    blk_t = steps_per_block * offset
    win = blk_t + 2 * padding
    assert blk_t % 128 == 0 or nblk == 1, "output block lane dim must be 128-aligned"

    # ---- glue (plain JAX) -------------------------------------------------
    # Per-block overlapping windows of the padded input: only 2*padding columns
    # per block are duplicated (vs win/offset x for a per-step unfold).
    px = jnp.pad(x, ((0, 0), (0, 0), (padding, padding)))
    idx = jnp.arange(nblk)[:, None] * blk_t + jnp.arange(win)[None, :]
    xw = jnp.transpose(px[:, :, idx], (0, 2, 1, 3))      # (B, nblk, C_res, win)

    # LVC weights -> (B, nblk, S_blk, 2*dc, radix*C_res), tap-major contraction
    # axis as the lane dim; cast to matmul dtype (bf16 halves the dominant DMA).
    w_t = jnp.transpose(weights, (0, 1, 2, 4, 3)).reshape(
        batch, nblk, steps_per_block, 2 * dc, radix * c_res).astype(matmul_dtype)

    wo_f = wo.astype(jnp.float32)
    bo2 = bo.reshape(-1, 1).astype(jnp.float32)

    # VMEM budget sanity check (v7x: 64 MiB physical / ~32 MiB scoped default;
    # raise pltpu.CompilerParams(vmem_limit_bytes=...) if pushing past this).
    w_item = jnp.dtype(matmul_dtype).itemsize
    vmem_est = (2 * (c_res * win * 4
                     + steps_per_block * 2 * dc * radix * c_res * w_item)
                + 2 * (c_res + skip_ch) * blk_t * x.dtype.itemsize
                + 2 * dc * blk_t * 4 + n_out * (dc + 1) * 4)
    assert vmem_est < 24 * 1024 * 1024, "block too big; lower steps_per_block"

    kernel = functools.partial(
        _lvc_kernel, radix=radix, dilation=dilation, padding=padding,
        offset=offset, steps_per_block=steps_per_block,
        dilation_channels=dc, residual_channels=c_res, matmul_dtype=matmul_dtype)

    res, skip = pl.pallas_call(
        kernel,
        out_shape=(
            jax.ShapeDtypeStruct((batch, c_res, T), x.dtype),
            jax.ShapeDtypeStruct((batch, skip_ch, T), x.dtype),
        ),
        grid_spec=pltpu.PrefetchScalarGridSpec(
            num_scalar_prefetch=0,
            grid=(batch, nblk),
            in_specs=[
                pl.BlockSpec((1, 1, c_res, win), lambda b, g: (b, g, 0, 0)),
                pl.BlockSpec((1, 1, steps_per_block, 2 * dc, radix * c_res),
                             lambda b, g: (b, g, 0, 0, 0)),
                pl.BlockSpec((n_out, dc), lambda b, g: (0, 0)),
                pl.BlockSpec((n_out, 1), lambda b, g: (0, 0)),
            ],
            out_specs=[
                pl.BlockSpec((1, c_res, blk_t), lambda b, g: (b, 0, g)),
                pl.BlockSpec((1, skip_ch, blk_t), lambda b, g: (b, 0, g)),
            ],
            scratch_shapes=[pltpu.VMEM((2 * dc, blk_t), jnp.float32)],
        ),
        compiler_params=pltpu.CompilerParams(
            dimension_semantics=("parallel", "parallel")),  # v7x: 2 TCs shard batch/blocks
    )(xw, w_t, wo_f, bo2)
    return res, skip


def _reference(x, weights, wo, bo, dilation, radix):
    """Pure-JAX f32 mirror of the PyTorch forward (non-last-layer path)."""
    batch, c_res, T = x.shape
    steps = weights.shape[1]
    dc = weights.shape[2] // 2
    offset = T // steps
    padding = dilation * (radix - 1) // 2
    win = 2 * padding + offset
    px = jnp.pad(x, ((0, 0), (0, 0), (padding, padding)))
    idx = jnp.arange(steps)[:, None] * offset + jnp.arange(win)[None, :]
    xu = jnp.transpose(px[:, :, idx], (0, 2, 1, 3))        # (B, steps, C_res, win)
    z = jnp.zeros((batch, steps, 2 * dc, offset), jnp.float32)
    for r in range(radix):
        z = z + jnp.einsum('bsoc,bsct->bsot', weights[..., r],
                           xu[:, :, :, r * dilation:r * dilation + offset])
    z = jnp.transpose(z, (0, 2, 1, 3)).reshape(batch, 2 * dc, T)
    g = jnp.tanh(z[:, :dc]) * jax.nn.sigmoid(z[:, dc:])    # fused_gate
    o = jnp.einsum('od,bdt->bot', wo, g) + bo[None, :, None]
    return o[:, :c_res] + x, o[:, c_res:]


if __name__ == "__main__":
    # Module hyperparameters (small channels, lane-dense time axis).
    batch = 2
    steps = 8
    offset = 64                       # -> T = 512 lanes per time block
    dilation, radix = 2, 3
    dilation_channels = 4
    residual_channels = 4
    skip_channels = 4
    T = steps * offset

    key = jax.random.PRNGKey(0)
    k1, k2, k3, k4 = jax.random.split(key, 4)
    x = jax.random.normal(k1, (batch, residual_channels, T), jnp.float32)
    # location-variable weights (the `weights` forward argument)
    lvc_weights = 0.1 * jax.random.normal(
        k2, (batch, steps, 2 * dilation_channels, residual_channels, radix),
        jnp.float32)
    # deterministic W_o parameters (Conv1d(dc, res+skip, 1, bias=True))
    wo = 0.1 * jax.random.normal(
        k3, (residual_channels + skip_channels, dilation_channels), jnp.float32)
    bo = 0.01 * jax.random.normal(
        k4, (residual_channels + skip_channels,), jnp.float32)

    res_ref, skip_ref = _reference(x, lvc_weights, wo, bo, dilation, radix)

    # Exactness check: f32 MXU operands.
    res32, skip32 = noncausal_layer_lvc(
        x, lvc_weights, wo, bo, dilation=dilation, radix=radix,
        matmul_dtype=jnp.float32)
    jax.block_until_ready((res32, skip32))
    assert jnp.allclose(res32, res_ref, atol=1e-4, rtol=1e-4)
    assert jnp.allclose(skip32, skip_ref, atol=1e-4, rtol=1e-4)

    # Production setting: bf16 MXU operands (f32 accumulation, f32 gate math).
    res, skip = noncausal_layer_lvc(
        x, lvc_weights, wo, bo, dilation=dilation, radix=radix,
        matmul_dtype=jnp.bfloat16)
    jax.block_until_ready((res, skip))
    assert jnp.allclose(res, res_ref, atol=5e-2, rtol=5e-2)
    assert jnp.allclose(skip, skip_ref, atol=5e-2, rtol=5e-2)

    # TODO(synk): last_layer=True path (W_o -> skip only, residual output None)
    # is not exercised here; only the standard residual+skip path is implemented.
    print("KERNEL_OK")
</pallas_src>

<mosaic_0001>
module attributes {stable_mosaic.version = 11 : i64} {
  func.func @_lvc_kernel(%arg0: i32, %arg1: i32, %arg2: memref<1x1x4x516xf32, #tpu.memory_space<vmem>>, %arg3: memref<1x1x8x8x12xf32, #tpu.memory_space<vmem>>, %arg4: memref<8x4xf32, #tpu.memory_space<vmem>>, %arg5: memref<8x1xf32, #tpu.memory_space<vmem>>, %arg6: memref<1x4x512xf32, #tpu.memory_space<vmem>>, %arg7: memref<1x4x512xf32, #tpu.memory_space<vmem>>, %arg8: memref<8x512xf32, #tpu.memory_space<vmem>>) attributes {dimension_semantics = [#tpu.dimension_semantics<parallel>, #tpu.dimension_semantics<parallel>], iteration_bounds = array<i64: 2, 1>, scalar_prefetch = 0 : i64, scratch_operands = 1 : i64, tpu.core_type = #tpu.core_type<tc>, window_params = [{transform_indices = @transform_0, window_bounds = array<i64: 1, 1, 4, 516>}, {transform_indices = @transform_1, window_bounds = array<i64: 1, 1, 8, 8, 12>}, {pipeline_mode = #tpu.pipeline_mode<synchronous>, transform_indices = @transform_2, window_bounds = array<i64: 8, 4>}, {pipeline_mode = #tpu.pipeline_mode<synchronous>, transform_indices = @transform_3, window_bounds = array<i64: 8, 1>}, {transform_indices = @transform_4, window_bounds = array<i64: 1, 4, 512>}, {transform_indices = @transform_5, window_bounds = array<i64: 1, 4, 512>}]} {
    %c0 = arith.constant 0 : index
    %c0_0 = arith.constant 0 : index
    %c0_1 = arith.constant 0 : index
    %c0_2 = arith.constant 0 : index
    %0 = vector.load %arg2[%c0, %c0_0, %c0_1, %c0_2] : memref<1x1x4x516xf32, #tpu.memory_space<vmem>>, vector<1x1x4x516xf32>
    %1 = vector.shape_cast %0 : vector<1x1x4x516xf32> to vector<4x516xf32>
    %2 = vector.extract_strided_slice %1 {offsets = [0, 0], sizes = [4, 512], strides = [1, 1]} : vector<4x516xf32> to vector<4x512xf32>
    %3 = vector.extract_strided_slice %1 {offsets = [0, 2], sizes = [4, 512], strides = [1, 1]} : vector<4x516xf32> to vector<4x512xf32>
    %4 = vector.extract_strided_slice %1 {offsets = [0, 4], sizes = [4, 512], strides = [1, 1]} : vector<4x516xf32> to vector<4x512xf32>
    %5 = tpu.concatenate %2, %3, %4 in 0 : vector<4x512xf32>, vector<4x512xf32>, vector<4x512xf32> -> vector<12x512xf32>
    %c0_3 = arith.constant 0 : index
    %c0_4 = arith.constant 0 : index
    %c0_5 = arith.constant 0 : index
    %c0_6 = arith.constant 0 : index
    %c0_7 = arith.constant 0 : index
    %6 = vector.load %arg3[%c0_3, %c0_4, %c0_5, %c0_6, %c0_7] : memref<1x1x8x8x12xf32, #tpu.memory_space<vmem>>, vector<1x1x1x8x12xf32>
    %7 = vector.shape_cast %6 : vector<1x1x1x8x12xf32> to vector<8x12xf32>
    %8 = vector.extract_strided_slice %5 {offsets = [0, 0], sizes = [12, 64], strides = [1, 1]} : vector<12x512xf32> to vector<12x64xf32>
    %cst = arith.constant dense<0.000000e+00> : vector<8x64xf32>
    %9 = tpu.matmul %7, %8, %cst {dimension_numbers = #tpu.dot_dimension_numbers<[1], [0], [0], [1], [0, 0, 1, 1], [], []>} : vector<8x12xf32>, vector<12x64xf32>, vector<8x64xf32> -> vector<8x64xf32>
    %c0_8 = arith.constant 0 : index
    %c0_9 = arith.constant 0 : index
    %10 = vector.load %arg8[%c0_8, %c0_9] : memref<8x512xf32, #tpu.memory_space<vmem>>, vector<8x64xf32>
    tpu.vector_store %arg8[%c0_8, %c0_9], %9 {strides = array<i32>} : memref<8x512xf32, #tpu.memory_space<vmem>>, vector<8x64xf32>,
    %c0_10 = arith.constant 0 : index
    %c0_11 = arith.constant 0 : index
    %c1 = arith.constant 1 : index
    %c0_12 = arith.constant 0 : index
    %c0_13 = arith.constant 0 : index
    %11 = vector.load %arg3[%c0_10, %c0_11, %c1, %c0_12, %c0_13] : memref<1x1x8x8x12xf32, #tpu.memory_space<vmem>>, vector<1x1x1x8x12xf32>
    %12 = vector.shape_cast %11 : vector<1x1x1x8x12xf32> to vector<8x12xf32>
    %13 = vector.extract_strided_slice %5 {offsets = [0, 64], sizes = [12, 64], strides = [1, 1]} : vector<12x512xf32> to vector<12x64xf32>
    %cst_14 = arith.constant dense<0.000000e+00> : vector<8x64xf32>
    %14 = tpu.matmul %12, %13, %cst_14 {dimension_numbers = #tpu.dot_dimension_numbers<[1], [0], [0], [1], [0, 0, 1, 1], [], []>} : vector<8x12xf32>, vector<12x64xf32>, vector<8x64xf32> -> vector<8x64xf32>
    %c0_15 = arith.constant 0 : index
    %c64 = arith.constant 64 : index
    %15 = vector.load %arg8[%c0_15, %c64] : memref<8x512xf32, #tpu.memory_space<vmem>>, vector<8x64xf32>
    tpu.vector_store %arg8[%c0_15, %c64], %14 {strides = array<i32>} : memref<8x512xf32, #tpu.memory_space<vmem>>, vector<8x64xf32>,
    %c0_16 = arith.constant 0 : index
    %c0_17 = arith.constant 0 : index
    %c2 = arith.constant 2 : index
    %c0_18 = arith.constant 0 : index
    %c0_19 = arith.constant 0 : index
    %16 = vector.load %arg3[%c0_16, %c0_17, %c2, %c0_18, %c0_19] : memref<1x1x8x8x12xf32, #tpu.memory_space<vmem>>, vector<1x1x1x8x12xf32>
    %17 = vector.shape_cast %16 : vector<1x1x1x8x12xf32> to vector<8x12xf32>
    %18 = vector.extract_strided_slice %5 {offsets = [0, 128], sizes = [12, 64], strides = [1, 1]} : vector<12x512xf32> to vector<12x64xf32>
    %cst_20 = arith.constant dense<0.000000e+00> : vector<8x64xf32>
    %19 = tpu.matmul %17, %18, %cst_20 {dimension_numbers = #tpu.dot_dimension_numbers<[1], [0], [0], [1], [0, 0, 1, 1], [], []>} : vector<8x12xf32>, vector<12x64xf32>, vector<8x64xf32> -> vector<8x64xf32>
    %c0_21 = arith.constant 0 : index
    %c128 = arith.constant 128 : index
    %20 = vector.load %arg8[%c0_21, %c128] : memref<8x512xf32, #tpu.memory_space<vmem>>, vector<8x64xf32>
    tpu.vector_store %arg8[%c0_21, %c128], %19 {strides = array<i32>} : memref<8x512xf32, #tpu.memory_space<vmem>>, vector<8x64xf32>,
    %c0_22 = arith.constant 0 : index
    %c0_23 = arith.constant 0 : index
    %c3 = arith.constant 3 : index
    %c0_24 = arith.constant 0 : index
    %c0_25 = arith.constant 0 : index
    %21 = vector.load %arg3[%c0_22, %c0_23, %c3, %c0_24, %c0_25] : memref<1x1x8x8x12xf32, #tpu.memory_space<vmem>>, vector<1x1x1x8x12xf32>
    %22 = vector.shape_cast %21 : vector<1x1x1x8x12xf32> to vector<8x12xf32>
    %23 = vector.extract_strided_slice %5 {offsets = [0, 192], sizes = [12, 64], strides = [1, 1]} : vector<12x512xf32> to vector<12x64xf32>
    %cst_26 = arith.constant dense<0.000000e+00> : vector<8x64xf32>
    %24 = tpu.matmul %22, %23, %cst_26 {dimension_numbers = #tpu.dot_dimension_numbers<[1], [0], [0], [1], [0, 0, 1, 1], [], []>} : vector<8x12xf32>, vector<12x64xf32>, vector<8x64xf32> -> vector<8x64xf32>
    %c0_27 = arith.constant 0 : index
    %c192 = arith.constant 192 : index
    %25 = vector.load %arg8[%c0_27, %c192] : memref<8x512xf32, #tpu.memory_space<vmem>>, vector<8x64xf32>
    tpu.vector_store %arg8[%c0_27, %c192], %24 {strides = array<i32>} : memref<8x512xf32, #tpu.memory_space<vmem>>, vector<8x64xf32>,
    %c0_28 = arith.constant 0 : index
    %c0_29 = arith.constant 0 : index
    %c4 = arith.constant 4 : index
    %c0_30 = arith.constant 0 : index
    %c0_31 = arith.constant 0 : index
    %26 = vector.load %arg3[%c0_28, %c0_29, %c4, %c0_30, %c0_31] : memref<1x1x8x8x12xf32, #tpu.memory_space<vmem>>, vector<1x1x1x8x12xf32>
    %27 = vector.shape_cast %26 : vector<1x1x1x8x12xf32> to vector<8x12xf32>
    %28 = vector.extract_strided_slice %5 {offsets = [0, 256], sizes = [12, 64], strides = [1, 1]} : vector<12x512xf32> to vector<12x64xf32>
    %cst_32 = arith.constant dense<0.000000e+00> : vector<8x64xf32>
    %29 = tpu.matmul %27, %28, %cst_32 {dimension_numbers = #tpu.dot_dimension_numbers<[1], [0], [0], [1], [0, 0, 1, 1], [], []>} : vector<8x12xf32>, vector<12x64xf32>, vector<8x64xf32> -> vector<8x64xf32>
    %c0_33 = arith.constant 0 : index
    %c256 = arith.constant 256 : index
    %30 = vector.load %arg8[%c0_33, %c256] : memref<8x512xf32, #tpu.memory_space<vmem>>, vector<8x64xf32>
    tpu.vector_store %arg8[%c0_33, %c256], %29 {strides = array<i32>} : memref<8x512xf32, #tpu.memory_space<vmem>>, vector<8x64xf32>,
    %c0_34 = arith.constant 0 : index
    %c0_35 = arith.constant 0 : index
    %c5 = arith.constant 5 : index
    %c0_36 = arith.constant 0 : index
    %c0_37 = arith.constant 0 : index
    %31 = vector.load %arg3[%c0_34, %c0_35, %c5, %c0_36, %c0_37] : memref<1x1x8x8x12xf32, #tpu.memory_space<vmem>>, vector<1x1x1x8x12xf32>
    %32 = vector.shape_cast %31 : vector<1x1x1x8x12xf32> to vector<8x12xf32>
    %33 = vector.extract_strided_slice %5 {offsets = [0, 320], sizes = [12, 64], strides = [1, 1]} : vector<12x512xf32> to vector<12x64xf32>
    %cst_38 = arith.constant dense<0.000000e+00> : vector<8x64xf32>
    %34 = tpu.matmul %32, %33, %cst_38 {dimension_numbers = #tpu.dot_dimension_numbers<[1], [0], [0], [1], [0, 0, 1, 1], [], []>} : vector<8x12xf32>, vector<12x64xf32>, vector<8x64xf32> -> vector<8x64xf32>
    %c0_39 = arith.constant 0 : index
    %c320 = arith.constant 320 : index
    %35 = vector.load %arg8[%c0_39, %c320] : memref<8x512xf32, #tpu.memory_space<vmem>>, vector<8x64xf32>
    tpu.vector_store %arg8[%c0_39, %c320], %34 {strides = array<i32>} : memref<8x512xf32, #tpu.memory_space<vmem>>, vector<8x64xf32>,
    %c0_40 = arith.constant 0 : index
    %c0_41 = arith.constant 0 : index
    %c6 = arith.constant 6 : index
    %c0_42 = arith.constant 0 : index
    %c0_43 = arith.constant 0 : index
    %36 = vector.load %arg3[%c0_40, %c0_41, %c6, %c0_42, %c0_43] : memref<1x1x8x8x12xf32, #tpu.memory_space<vmem>>, vector<1x1x1x8x12xf32>
    %37 = vector.shape_cast %36 : vector<1x1x1x8x12xf32> to vector<8x12xf32>
    %38 = vector.extract_strided_slice %5 {offsets = [0, 384], sizes = [12, 64], strides = [1, 1]} : vector<12x512xf32> to vector<12x64xf32>
    %cst_44 = arith.constant dense<0.000000e+00> : vector<8x64xf32>
    %39 = tpu.matmul %37, %38, %cst_44 {dimension_numbers = #tpu.dot_dimension_numbers<[1], [0], [0], [1], [0, 0, 1, 1], [], []>} : vector<8x12xf32>, vector<12x64xf32>, vector<8x64xf32> -> vector<8x64xf32>
    %c0_45 = arith.constant 0 : index
    %c384 = arith.constant 384 : index
    %40 = vector.load %arg8[%c0_45, %c384] : memref<8x512xf32, #tpu.memory_space<vmem>>, vector<8x64xf32>
    tpu.vector_store %arg8[%c0_45, %c384], %39 {strides = array<i32>} : memref<8x512xf32, #tpu.memory_space<vmem>>, vector<8x64xf32>,
    %c0_46 = arith.constant 0 : index
    %c0_47 = arith.constant 0 : index
    %c7 = arith.constant 7 : index
    %c0_48 = arith.constant 0 : index
    %c0_49 = arith.constant 0 : index
    %41 = vector.load %arg3[%c0_46, %c0_47, %c7, %c0_48, %c0_49] : memref<1x1x8x8x12xf32, #tpu.memory_space<vmem>>, vector<1x1x1x8x12xf32>
    %42 = vector.shape_cast %41 : vector<1x1x1x8x12xf32> to vector<8x12xf32>
    %43 = vector.extract_strided_slice %5 {offsets = [0, 448], sizes = [12, 64], strides = [1, 1]} : vector<12x512xf32> to vector<12x64xf32>
    %cst_50 = arith.constant dense<0.000000e+00> : vector<8x64xf32>
    %44 = tpu.matmul %42, %43, %cst_50 {dimension_numbers = #tpu.dot_dimension_numbers<[1], [0], [0], [1], [0, 0, 1, 1], [], []>} : vector<8x12xf32>, vector<12x64xf32>, vector<8x64xf32> -> vector<8x64xf32>
    %c0_51 = arith.constant 0 : index
    %c448 = arith.constant 448 : index
    %45 = vector.load %arg8[%c0_51, %c448] : memref<8x512xf32, #tpu.memory_space<vmem>>, vector<8x64xf32>
    tpu.vector_store %arg8[%c0_51, %c448], %44 {strides = array<i32>} : memref<8x512xf32, #tpu.memory_space<vmem>>, vector<8x64xf32>,
    %c0_52 = arith.constant 0 : index
    %c0_53 = arith.constant 0 : index
    %46 = vector.load %arg8[%c0_52, %c0_53] : memref<8x512xf32, #tpu.memory_space<vmem>>, vector<8x512xf32>
    %47 = vector.extract_strided_slice %46 {offsets = [0, 0], sizes = [4, 512], strides = [1, 1]} : vector<8x512xf32> to vector<4x512xf32>
    %48 = math.tanh %47 : vector<4x512xf32>
    %49 = vector.extract_strided_slice %46 {offsets = [4, 0], sizes = [4, 512], strides = [1, 1]} : vector<8x512xf32> to vector<4x512xf32>
    %50 = arith.negf %49 : vector<4x512xf32>
    %51 = math.exp %50 : vector<4x512xf32>
    %cst_54 = arith.constant 1.000000e+00 : f32
    %52 = vector.broadcast %cst_54 : f32 to vector<4x512xf32>
    %53 = arith.addf %52, %51 : vector<4x512xf32>
    %54 = arith.divf %52, %53 : vector<4x512xf32>
    %55 = arith.mulf %48, %54 : vector<4x512xf32>
    %c0_55 = arith.constant 0 : index
    %c0_56 = arith.constant 0 : index
    %56 = vector.load %arg4[%c0_55, %c0_56] : memref<8x4xf32, #tpu.memory_space<vmem>>, vector<8x4xf32>
    %cst_57 = arith.constant dense<0.000000e+00> : vector<8x512xf32>
    %57 = tpu.matmul %56, %55, %cst_57 {dimension_numbers = #tpu.dot_dimension_numbers<[1], [0], [0], [1], [0, 0, 1, 1], [], []>} : vector<8x4xf32>, vector<4x512xf32>, vector<8x512xf32> -> vector<8x512xf32>
    %c0_58 = arith.constant 0 : index
    %c0_59 = arith.constant 0 : index
    %58 = vector.load %arg5[%c0_58, %c0_59] : memref<8x1xf32, #tpu.memory_space<vmem>>, vector<8x1xf32>
    %59 = vector.broadcast %58 : vector<8x1xf32> to vector<8x512xf32>
    %60 = arith.addf %57, %59 : vector<8x512xf32>
    %61 = vector.extract_strided_slice %1 {offsets = [0, 2], sizes = [4, 512], strides = [1, 1]} : vector<4x516xf32> to vector<4x512xf32>
    %62 = vector.extract_strided_slice %60 {offsets = [0, 0], sizes = [4, 512], strides = [1, 1]} : vector<8x512xf32> to vector<4x512xf32>
    %63 = arith.addf %62, %61 : vector<4x512xf32>
    %c0_60 = arith.constant 0 : index
    %c0_61 = arith.constant 0 : index
    %c0_62 = arith.constant 0 : index
    %64 = vector.load %arg6[%c0_60, %c0_61, %c0_62] : memref<1x4x512xf32, #tpu.memory_space<vmem>>, vector<1x4x512xf32>
    %65 = vector.shape_cast %64 : vector<1x4x512xf32> to vector<4x512xf32>
    %66 = vector.shape_cast %63 : vector<4x512xf32> to vector<1x4x512xf32>
    tpu.vector_store %arg6[%c0_60, %c0_61, %c0_62], %66 {strides = array<i32>} : memref<1x4x512xf32, #tpu.memory_space<vmem>>, vector<1x4x512xf32>,
    %67 = vector.extract_strided_slice %60 {offsets = [4, 0], sizes = [4, 512], strides = [1, 1]} : vector<8x512xf32> to vector<4x512xf32>
    %c0_63 = arith.constant 0 : index
    %c0_64 = arith.constant 0 : index
    %c0_65 = arith.constant 0 : index
    %68 = vector.load %arg7[%c0_63, %c0_64, %c0_65] : memref<1x4x512xf32, #tpu.memory_space<vmem>>, vector<1x4x512xf32>
    %69 = vector.shape_cast %68 : vector<1x4x512xf32> to vector<4x512xf32>
    %70 = vector.shape_cast %67 : vector<4x512xf32> to vector<1x4x512xf32>
    tpu.vector_store %arg7[%c0_63, %c0_64, %c0_65], %70 {strides = array<i32>} : memref<1x4x512xf32, #tpu.memory_space<vmem>>, vector<1x4x512xf32>,
    return
  }
  func.func @transform_0(%arg0: i32, %arg1: i32) -> (i32, i32, i32, i32) {
    %c0_i32 = arith.constant 0 : i32
    %c0_i32_0 = arith.constant 0 : i32
    %c0_i32_1 = arith.constant 0 : i32
    return %arg0, %arg1, %c0_i32, %c0_i32_0 : i32, i32, i32, i32
  }
  func.func @transform_1(%arg0: i32, %arg1: i32) -> (i32, i32, i32, i32, i32) {
    %c0_i32 = arith.constant 0 : i32
    %c0_i32_0 = arith.constant 0 : i32
    %c0_i32_1 = arith.constant 0 : i32
    %c0_i32_2 = arith.constant 0 : i32
    return %arg0, %arg1, %c0_i32, %c0_i32_0, %c0_i32_1 : i32, i32, i32, i32, i32
  }
  func.func @transform_2(%arg0: i32, %arg1: i32) -> (i32, i32) {
    %c0_i32 = arith.constant 0 : i32
    %c0_i32_0 = arith.constant 0 : i32
    %c0_i32_1 = arith.constant 0 : i32
    return %c0_i32, %c0_i32_0 : i32, i32
  }
  func.func @transform_3(%arg0: i32, %arg1: i32) -> (i32, i32) {
    %c0_i32 = arith.constant 0 : i32
    %c0_i32_0 = arith.constant 0 : i32
    %c0_i32_1 = arith.constant 0 : i32
    return %c0_i32, %c0_i32_0 : i32, i32
  }
  func.func @transform_4(%arg0: i32, %arg1: i32) -> (i32, i32, i32) {
    %c0_i32 = arith.constant 0 : i32
    %c0_i32_0 = arith.constant 0 : i32
    return %arg0, %c0_i32, %arg1 : i32, i32, i32
  }
  func.func @transform_5(%arg0: i32, %arg1: i32) -> (i32, i32, i32) {
    %c0_i32 = arith.constant 0 : i32
    %c0_i32_0 = arith.constant 0 : i32
    return %arg0, %c0_i32, %arg1 : i32, i32, i32
  }
}

</mosaic_0001>

<bundles_post_ra>
// kernel: tpu_custom_call.1
= control target key start
LH: loop header
LB: loop body
LE: loop exit
PB: predicated region body
PF: predicated region fallthrough
CT: control target
= control target key end

     0   :  { %11 = vsyncpa [#allocation4], 0  ;;  %s1778_s0 = inlined_call_operand.hbm [shape: f32[2,1,4,516], index: 0, kind: input, shape index: {}]   ;;  %s1779_s1 = inlined_call_operand.hbm [shape: f32[2,1,8,8,12], index: 1, kind: input, shape index: {}]   ;;  %s1780_s2 = inlined_call_operand.vmem [shape: f32[8,4], index: 2, kind: input, shape index: {}]   ;;  %s1781_s3 = inlined_call_operand.vmem [shape: f32[8,1], index: 3, kind: input, shape index: {}]   ;;  %s1782_s4 = inlined_call_operand.hbm [shape: f32[2,4,512], index: 4, kind: output, shape index: {0}]   ;;  %s1783_s5 = inlined_call_operand.hbm [shape: f32[2,4,512], index: 5, kind: output, shape index: {1}]  }
   0x1   :  { %13 = vsyncpa [#allocation4 + $0x1], 0 }
   0x2   :  { %14 = vsyncpa [#allocation7], 0 }
   0x3   :  { %16 = vsyncpa [#allocation7 + $0x1], 0 }
   0x4   :  { %17 = vsyncpa [#allocation5], 0 }
   0x5   :  { %19 = vsyncpa [#allocation5 + $0x1], 0 }
   0x6   :  { %20 = vsyncpa [#allocation10], 0 }
   0x7   :  { %22 = vsyncpa [#allocation10 + $0x1], 0  ;;  %s1511_s18 = smov 0   ;;  %s1513_s19 = smov 0  }
   0x8   :  { %s1515_s20 = smov 0   ;;  %s1517_s21 = smov 0  }
   0x9   :  { %s1519_s22 = smov 0   ;;  %s1521_s23 = smov 0  }
   0xa LB: > { %s1115_s24 = sadd.s32 4294967295, %s1473_s23   ;;  %s1116_s25 = sadd.s32 4294967294, %s1473_s23   ;;  %s1473_s23 = sphi %s1521_s23, %s28_s23   ;;  %s1469_s22 = sphi %s1519_s22, %s1798_s22   ;;  %s1465_s21 = sphi %s1517_s21, %s1797_s21   ;;  %s1461_s20 = sphi %s1515_s20, %s1796_s20   ;;  %s1457_s19 = sphi %s1513_s19, %s1795_s19   ;;  %s1453_s18 = sphi %s1511_s18, %s1794_s18  }
   0xb   : > { %s40_s26 = sadd.s32 1, %s1469_s22  ;;  %s49_s27 = sadd.s32 1, %s1461_s20 }
   0xc   : > { %p42_p0 = scmp.ge.s32.totalorder %s40_s26, 2  ;;  %p56_p1 = scmp.ne.s32.totalorder %s1461_s20, %s1457_s19 }
   0xd   : > { %p57_p2 = scmp.eq.s32.totalorder %s1473_s23, 0  ;;  %p62_p3 = scmp.ne.s32.totalorder %s1457_s19, %s1453_s18 }
   0xe   : > { %s1800_s26 = smov (%p42_p0, %s40_s26), 0  ;;  %p63_p5 = scmp.eq.s32.totalorder %s1115_s24, 0 }
   0xf   : > { %1785 = sst [smem:[#allocation15_spill]] %s1800_s26  ;;  %p1552_p4 = por %p57_p2, %p56_p1 }
  0x10   : > { %s44_s29 = ssub.s32 %s1469_s22, %s1800_s26  ;;  %p158_p6 = scmp.eq.s32.totalorder %s1115_s24, 1 }
  0x11   : > { %p47_p7 = scmp.eq.s32.totalorder %s44_s29, 0  ;;  %p1558_p8 = por %p63_p5, %p62_p3 }
  0x12   : > { %p1562_p9 = por %p158_p6, %p56_p1  ;;  %p164_p10 = scmp.eq.s32.totalorder %s1116_s25, 1 }
  0x13   : > { %s1567_s7 = scalar_select %p47_p7, %s1461_s20, %s49_s27  }
  0x14   : > { %p1569_p11 = por %p164_p10, %p62_p3  ;;  %p1118_p12 = scmp.ge.s32.totalorder %s1473_s23, 2 }
  0x15   : > { %1789 = sst [smem:[#allocation16_spill]] %s1567_s7  ;;  %p1198_p13 = scmp.lt.s32.totalorder %s1473_s23, 2 }
  0x16   : > { %s1576_s9 = sand.u32 1, %s1461_s20   ;;  %s1174_s11 = smul.u32 20, %s1469_s22 }
  0x17   : > { %s1173_s10 = smul.u32 20, %s1576_s9  ;;  %p1582_p0 = pnand %p1198_p13, %p1552_p4 }
  0x18   : > { %p1123_p1 = scmp.ge.s32.totalorder %s1473_s23, 1  ;;  %s229_s15 = scalar_lea.hbm %s1778_s0, %s1174_s11 }
  0x19   : > { %s222_s16 = scalar_lea.vmem [#allocation3], %s1173_s10  ;;  %s231_s24 = sshll.u32 %s229_s15, 4  ;;  %s232_s24 = int_to_ptr.hbm [resolvable:$true] %s231_s24 }
  0x1a   : > { %s233_s17 = sshll.u32 %s222_s16, 4  ;;  %s219_s25 = scalar_lea.sflag [#allocation4], %s1576_s9  ;;  %s234_s17 = int_to_ptr.vmem [resolvable:$true] %s233_s17 }
  0x1b   : > { %1187 = dma.hbm_to_vmem [thread:$0]  (!%p1582_p0), %s232_s24, 320, %s234_s17, %s219_s25  }
  0x1c   : > { %p262_p2 = scmp.lt.s32.totalorder %s1473_s23, 3  ;;  %s1120_s27 = sshll.u32 %s1576_s9, 6 }
  0x1d   : > { %s1170_s28 = sshll.u32 %s1469_s22, 6  ;;  %s244_s13 = scalar_lea.vmem [#allocation6], %s1120_s27 }
  0x1e   : > { %p263_p3 = pnand %p1123_p1, %p262_p2  ;;  %s251_s7 = scalar_lea.hbm %s1779_s1, %s1170_s28 }
  0x1f   : > { %s254_s11 = sshll.u32 %s244_s13, 4  ;;  %s252_s10 = sshll.u32 %s251_s7, 4  ;;  %s255_s11 = int_to_ptr.vmem [resolvable:$true] %s254_s11  ;;  %s253_s10 = int_to_ptr.hbm [resolvable:$true] %s252_s10 }
  0x20   : > { %s241_s14 = scalar_lea.sflag [#allocation7], %s1576_s9  ;;  %s1475_s15 = smov 128  }
  0x21   : > { %s1476_s16 = smov 8   ;;  %266 = sbr.rel (%p263_p3) target bundleno = 755 (0x2f3), region = 36 }
  0x22   : > { %1190 = dma.hbm_to_vmem [thread:$0]  (!%p1582_p0), %s253_s10, 1024, %s255_s11, %s241_s14, %s1475_s15, %s1475_s15, %s1476_s16  }
  0x23   : > { %s1603_s17 = sand.u32 (!%p263_p3), 1, %s1457_s19  }
  0x24   : > { %s1175_s24 = smul.u32 (!%p263_p3), 20, %s1603_s17  ;;  %s269_s26 = scalar_lea.sflag (!%p263_p3), [#allocation4], %s1603_s17 }
  0x26   : > { %s272_s25 = scalar_lea.vmem [#allocation3], %s1175_s24 }
  0x27   : > { %1436 = dma.done.wait (%p1558_p8), %s269_s26, 320  }
  0x28   : > { %1438 = vsyncadd (%p1558_p8), %s269_s26, 4294966976  ;;  %s1124_s7 = sshll.u32 %s1603_s17, 6  ;;  %s279_s9 = scalar_lea.sflag [#allocation7], %s1603_s17 }
  0x29   : > { %s1613_s12 = scalar_lea.vmem [#allocation6], %s1124_s7 }
  0x2a   : > { %1440 = dma.done.wait (%p1558_p8), %s279_s9, 1024  }
  0x2b   : > { %1442 = vsyncadd (%p1558_p8), %s279_s9, 4294966272  ;;  %v322_v0 = vld [vmem:[%s272_s25] sm:$0xff]  ;;  %v323_v1 = vld [vmem:[%s272_s25 + $0x8] sm:$0xff]  ;;  %s1477_s30 = smov 126   ;;  %s1478_s27 = smov 124   ;;  %vm360_vm0 = vcmask 1031168  }
  0x2c   : > { %v324_v2 = vld [vmem:[%s272_s25 + $0x10] sm:$0xf]  ;;  %327 = vst [vmem:[#allocation1] ss:$2 sm:$0xff] %v322_v0  ;;  %vm394_vm1 = vcmask 1043456   ;;  %vm389_vm2 = vcmask 1014784  }
  0x2d   : > { %329 = vst [vmem:[#allocation1 + $0x10] ss:$2 sm:$0xff] %v323_v1  ;;  %s1479_s28 = smov 64   ;;  %vm400_vm3 = vcmask 97280   ;;  %v399_v44 = vld [vmem:[%s1613_s12] sm:$0xff]  ;;  %v1132_v45 = vld [vmem:[%s1613_s12 + $0x10] sm:$0xff] }
  0x2e   : > { %344 = vst [vmem:[#allocation1 + $0x21] ss:$2 sm:$0xff] %v324_v2  ;;  %v1144_v47 = vld [vmem:[%s1613_s12 + $0x30] sm:$0xff]  ;;  %v1138_v48 = vld [vmem:[%s1613_s12 + $0x20] sm:$0xff]  ;;  %v1135_v51 = vld [vmem:[%s1613_s12 + $0x18] sm:$0xff]  ;;  %vm426_vm4 = vcmask 523264  }
  0x2f   : > { %v1129_v55 = vld [vmem:[%s1613_s12 + $0x8] sm:$0xff]  ;;  %v1147_v57 = vld [vmem:[%s1613_s12 + $0x38] sm:$0xff]  ;;  %vm465_vm5 = vcmask 1048064   ;;  %vm772_vm10 = vcmask 31744   ;;  %s1171_s14 = sshll.u32 %s1465_s21, 4  ;;  %s1125_s15 = sshll.u32 %s1603_s17, 4 }
  0x30   : > { %v1141_v59 = vld [vmem:[%s1613_s12 + $0x28] sm:$0xff]  ;;  %s947_s26 = scalar_lea.hbm %s1782_s4, %s1171_s14  ;;  %s964_s7 = scalar_lea.hbm %s1783_s5, %s1171_s14 }
  0x31   : > { %s312_s9 = scalar_lea.vmem [#allocation8], %s1125_s15  ;;  %s968_s29 = sshll.u32 %s964_s7, 4  ;;  %s1728_s29 = int_to_ptr.hbm [resolvable:$true] %s968_s29 }
  0x32   : > { %s949_s12 = sshll.u32 %s312_s9, 4  ;;  %s929_s13 = scalar_lea.sflag [#allocation5], %s1603_s17  ;;  %s950_s12 = int_to_ptr.vmem [resolvable:$true] %s949_s12 }
  0x33   : > { %v330_v3 = vld.sshfl [vmem:[#allocation1] sm:$0xff pattern:$0x75316420]  ;;  %v331_v4 = vld.sshfl [vmem:[#allocation1 + $0x8] sm:$0xff pattern:$0x75316420] }
  0x34   : > { %v1619_v5 = vld.sshfl [vmem:[#allocation1 + $0x10] sm:$0xff pattern:$0x75316420]  ;;  %v1621_v6 = vld.sshfl [vmem:[#allocation1 + $0x18] sm:$0xff pattern:$0x75316420] }
  0x35   : > { %340 = vst [vmem:[#allocation1 + $0x1] ss:$2 sm:$0xff] %v322_v0  ;;  %v349_v7 = vld.sshfl [vmem:[#allocation1 + $0x20] sm:$0xff pattern:$0x75316420]  ;;  %s1375_s16 = scalar_lea.hbm %s1782_s4, 32 }
  0x36   : > { %342 = vst [vmem:[#allocation1 + $0x11] ss:$2 sm:$0xff] %v323_v1 }
  0x37   : > { %373 = vst [vmem:[#allocation1 + $0x20] ss:$2 sm:$0xff] %v324_v2 }
  0x3c   : > { %v346_v8 = vld.sshfl [vmem:[#allocation1 + $0x8] sm:$0xff pattern:$0x75316420]  ;;  %v345_v9 = vld.sshfl [vmem:[#allocation1] sm:$0xff pattern:$0x75316420] }
  0x3d   : > { %v347_v10 = vld.sshfl [vmem:[#allocation1 + $0x10] sm:$0xff pattern:$0x75316420]  ;;  %v348_v11 = vld.sshfl [vmem:[#allocation1 + $0x18] sm:$0xff pattern:$0x75316420] }
  0x3e   : > { %371 = vst [vmem:[#allocation1 + $0x10] ss:$2 sm:$0xff] %v323_v1  ;;  %v1254_v12 = vpack.i.bf16 %v347_v10, %v346_v8  ;;  %v1259_v13 = vpack.i.bf16 %v348_v11, %v345_v9  ;;  %v378_v14 = vld.sshfl [vmem:[#allocation1 + $0x20] sm:$0xff pattern:$0x75316420] }
  0x3f   : > { %369 = vst [vmem:[#allocation1] ss:$2 sm:$0xff] %v322_v0 }
  0x40   : > { %1255 = vrot.lane.b32.xlu1 %v1254_v12, %s1477_s30  ;;  %872 = vst [vmem:[#allocation1 + $0x20] ss:$2 sm:$0xff] %v324_v2  ;;  %1260 = vrot.lane.b32.xlu2 %v1259_v13, %s1477_s30 }
  0x45   : > { %v377_v15 = vld.sshfl [vmem:[#allocation1 + $0x18] sm:$0xff pattern:$0x75316420]  ;;  %v376_v18 = vld.sshfl [vmem:[#allocation1 + $0x10] sm:$0xff pattern:$0x75316420] }
  0x46   : > { %v375_v16 = vld.sshfl [vmem:[#allocation1 + $0x8] sm:$0xff pattern:$0x75316420]  ;;  %v374_v17 = vld.sshfl [vmem:[#allocation1] sm:$0xff pattern:$0x75316420] }
  0x47   : > { %381 = vrot.lane.b32.xlu0 %v375_v16, %s1478_s27  ;;  %868 = vst [vmem:[#allocation1] ss:$2 sm:$0xff] %v322_v0 }
  0x48   : > { %379 = vrot.lane.b32.xlu1 %v374_v17, %s1478_s27  ;;  %870 = vst [vmem:[#allocation1 + $0x10] ss:$2 sm:$0xff] %v323_v1  ;;  %385 = vrot.lane.b32.xlu2 %v377_v15, %s1478_s27 }
  0x4f   : > { %383 = vrot.lane.b32.xlu0 %v376_v18, %s1478_s27 }
  0x50   : > { %358 = vrot.lane.b32.xlu1 %v349_v7, %s1477_s30 }
  0x57   : > { %387 = vrot.lane.b32.xlu0 %v378_v14, %s1478_s27  ;;  %s319_s27 = scalar_lea.vmem [#allocation9], %s1125_s15 }
  0x9a   : > { %v1261_v19 = vpop.permute.xlu2 %1260 }
  0x9b   : > { %v1262_v20 = vunpack.i.l.bf16 %v1261_v19  ;;  %v1263_v32 = vunpack.i.h.bf16 %v1261_v19 }
  0xa2   : > { %v386_v33 = vpop.permute.xlu2 %385 }
  0xb2   : > { %v1256_v21 = vpop.permute.xlu1 %1255 }
  0xb3   : > { %v1258_v22 = vunpack.i.h.bf16 %v1256_v21  ;;  %v1257_v23 = vunpack.i.l.bf16 %v1256_v21 }
  0xb5   : > { %v362_v24 = vsel %vm360_vm0, %v1257_v23, %v1258_v22  ;;  %v361_v25 = vsel %vm360_vm0, %v1262_v20, %v1257_v23  ;;  %v363_v38 = vsel %vm360_vm0, %v1258_v22, %v1263_v32 }
  0xb6   : > { %v395_v26 = vsel %vm394_vm1, %v330_v3, %v361_v25  ;;  %v396_v27 = vsel %vm394_vm1, %v331_v4, %v362_v24  ;;  %v397_v41 = vsel %vm394_vm1, %v1619_v5, %v363_v38  ;;  %v874_v38 = vld.sshfl [vmem:[#allocation1 + $0x8] sm:$0xff pattern:$0x75316420] }
  0xb7   : > { %v1264_v28 = vpack.i.bf16 %v395_v26, %v396_v27 }
  0xb9   : > { %v382_v29 = vpop.permute.xlu0 %381  ;;  %1265 = vrot.lane.b32.xlu0 %v1264_v28, %s1479_s28  ;;  %v1687_v28 = vld [vmem:[%s1780_s2] sm:$0xff] }
  0xba   : > { %v380_v30 = vpop.permute.xlu1 %379 }
  0xbb   : > { %v390_v31 = vsel %vm389_vm2, %v380_v30, %v382_v29 }
  0xbc   : > { %433 = vrot.lane.b32.xlu1 %v390_v31, %s1479_s28  ;;  %1127 = vmatpush.msk.msra.mxu0 %vm394_vm1, %v390_v31 }
  0xbe   : > { %421 = vmatpush.msra.mxu0 %v395_v26 }
  0xbf   : > { %1128 = vmatmul.msk.f32.vlgmr.msra.gmra.mxu0 %vm400_vm3, %v399_v44 }
  0xc1   : > { %v384_v34 = vpop.permute.xlu0 %383 }
  0xc2   : > { %v391_v35 = vsel %vm389_vm2, %v382_v29, %v384_v34  ;;  %v392_v36 = vsel %vm389_vm2, %v384_v34, %v386_v33  ;;  %v359_v37 = vpop.permute.xlu1 %358 }
  0xc3   : > { %500 = vrot.lane.b32.xlu2 %v391_v35, %s1479_s28  ;;  %1133 = vmatpush.msk.msra.mxu2 %vm394_vm1, %v391_v35  ;;  %v364_v39 = vsel %vm360_vm0, %v1263_v32, %v359_v37  ;;  %v766_v35 = vld [vmem:[%s1781_s3] sm:$0xff]  ;;  %v1480_v37 = vmov 0  }
  0xc4   : > { %1139 = vmatpush.msk.msrb.mxu0 %vm394_vm1, %v392_v36  ;;  %566 = vrot.lane.b32.xlu1 %v392_v36, %s1479_s28  ;;  %v398_v40 = vsel %vm394_vm1, %v1621_v6, %v364_v39  ;;  %v875_v36 = vld.sshfl [vmem:[#allocation1 + $0x10] sm:$0xff pattern:$0x75316420] }
  0xc5   : > { %489 = vmatpush.msra.mxu2 %v396_v27  ;;  %630 = vrot.lane.b32.xlu0 %v398_v40, %s1479_s28 }
  0xc6   : > { %555 = vmatpush.msrb.mxu0 %v397_v41  ;;  %1134 = vmatmul.msk.f32.vlgmr.msra.gmra.mxu2 %vm400_vm3, %v1132_v45 }
  0xc7   : > { %1140 = vmatmul.msk.f32.vlgmr.msrb.gmra.mxu0 %vm400_vm3, %v1138_v48  ;;  %1269 = vset.pattern.permute.xlu1 %v1480_v37 }
  0xc8   : > { %1270 = vset.pattern.permute.xlu0 %v1480_v37 }
  0xc9   : > { %v388_v42 = vpop.permute.xlu0 %387 }
  0xca   : > { %v393_v43 = vsel %vm389_vm2, %v386_v33, %v388_v42 }
  0xcb   : > { %632 = vrot.lane.b32.xlu2 %v393_v43, %s1479_s28  ;;  %1145 = vmatpush.msk.msrb.mxu2 %vm394_vm1, %v393_v43  ;;  %v876_v43 = vld.sshfl [vmem:[#allocation1 + $0x18] sm:$0xff pattern:$0x75316420] }
  0xcd   : > { %621 = vmatpush.msrb.mxu2 %v398_v40 }
  0xce   : > { %1146 = vmatmul.msk.f32.vlgmr.msrb.gmra.mxu2 %vm400_vm3, %v1144_v47 }
  0xd3   : > { %564 = vrot.lane.b32.xlu2 %v397_v41, %s1479_s28  ;;  %v873_v41 = vld.sshfl [vmem:[#allocation1] sm:$0xff pattern:$0x75316420] }
 0x11d   : > { %v501_v46 = vpop.permute.xlu2 %500 }
 0x11e   : > { %1136 = vmatpush.msk.msra.mxu3 %vm394_vm1, %v501_v46  ;;  %v877_v46 = vld.sshfl [vmem:[#allocation1 + $0x20] sm:$0xff pattern:$0x75316420] }
 0x125   : > { %v633_v52 = vpop.permute.xlu2 %632 }
 0x12b   : > { %v1266_v49 = vpop.permute.xlu0 %1265 }
 0x12c   : > { %v1267_v50 = vunpack.i.l.bf16 %v1266_v49  ;;  %v1268_v54 = vunpack.i.h.bf16 %v1266_v49 }
 0x12d   : > { %v565_v60 = vpop.permute.xlu2 %564 }
 0x12e   : > { %523 = vmatpush.msra.mxu3 %v1267_v50  ;;  %v434_v53 = vpop.permute.xlu1 %433 }
 0x12f   : > { %1130 = vmatpush.msk.msra.mxu1 %vm394_vm1, %v434_v53  ;;  %1137 = vmatmul.msk.f32.vlgmr.msra.gmra.mxu3 %vm400_vm3, %v1135_v51 }
 0x130   : > { %1148 = vmatpush.msk.msrb.mxu3 %vm394_vm1, %v633_v52 }
 0x131   : > { %456 = vmatpush.msra.mxu1 %v1268_v54 }
 0x132   : > { %1131 = vmatmul.msk.f32.vlgmr.msra.gmra.mxu1 %vm400_vm3, %v1129_v55 }
 0x136   : > { %v567_v56 = vpop.permute.xlu1 %566 }
 0x137   : > { %v631_v58 = vpop.permute.xlu0 %630  ;;  %1142 = vmatpush.msk.msrb.mxu1 %vm394_vm1, %v567_v56 }
 0x138   : > { %655 = vmatpush.msrb.mxu3 %v631_v58 }
 0x139   : > { %589 = vmatpush.msrb.mxu1 %v565_v60  ;;  %1149 = vmatmul.msk.f32.vlgmr.msrb.gmra.mxu3 %vm400_vm3, %v1147_v57 }
 0x13a   : > { %1143 = vmatmul.msk.f32.vlgmr.msrb.gmra.mxu1 %vm400_vm3, %v1141_v59 }
 0x13c   : > { %v423_v61 = vpop.f32.mrf.mxu0 }
 0x13d   : > { %427 = vst.msk [vmem:[#allocation2] sm:$0xff] %vm426_vm4, %v423_v61 }
 0x144   : > { %v557_v3 = vpop.f32.mrf.mxu0 }
 0x145   : > { %560 = vst.msk [vmem:[#allocation2 + $0x10] sm:$0xff] %vm426_vm4, %v557_v3 }
 0x149   : > { %v491_v2 = vpop.f32.mrf.mxu2 }
 0x14a   : > { %494 = vst.msk [vmem:[#allocation2 + $0x8] sm:$0xff] %vm426_vm4, %v491_v2 }
 0x151   : > { %v623_v5 = vpop.f32.mrf.mxu2 }
 0x152   : > { %626 = vst.msk [vmem:[#allocation2 + $0x18] sm:$0xff] %vm426_vm4, %v623_v5 }
 0x1af   : > { %v458_v62 = vpop.f32.mrf.mxu1 }
 0x1b0   : > { %462 = vrot.lane.b32.xlu2 %v458_v62, %s1479_s28 }
 0x1b2   : > { %v525_v63 = vpop.f32.mrf.mxu3 }
 0x1b7   : > { %v591_v0 = vpop.f32.mrf.mxu1 }
 0x1b8   : > { %595 = vrot.lane.b32.xlu0 %v591_v0, %s1479_s28  ;;  %880 = vrot.lane.b32.xlu2 %v874_v38, %s1477_s30 }
 0x1bc   : > { %v657_v1 = vpop.f32.mrf.mxu3 }
 0x1bd   : > { %661 = vrot.lane.b32.xlu1 %v657_v1, %s1479_s28 }
 0x1c0   : > { %529 = vrot.lane.b32.xlu0 %v525_v63, %s1479_s28  ;;  %886 = vrot.lane.b32.xlu2 %v877_v46, %s1477_s30  ;;  %s966_s28 = sshll.u32 %s319_s27, 4  ;;  %s1726_s28 = int_to_ptr.vmem [resolvable:$true] %s966_s28 }
 0x1c5   : > { %769 = vperm.xlu1 %1269, %v766_v35  }
 0x1c8   : > { %882 = vrot.lane.b32.xlu0 %v875_v36, %s1477_s30 }
 0x1cd   : > { %884 = vrot.lane.b32.xlu1 %v876_v43, %s1477_s30 }
 0x1d0   : > { %878 = vrot.lane.b32.xlu0 %v873_v41, %s1477_s30  ;;  %s951_s30 = sshll.u32 %s947_s26, 4  ;;  %s952_s30 = int_to_ptr.hbm [resolvable:$true] %s951_s30 }
 0x1d1   : > { %s1369_s11 = sshra.s32 %s952_s30, 4  ;;  %s1370_s11 = int_to_ptr.hbm [resolvable:$true] %s1369_s11 }
 0x1d2   : > { %s1371_s10 = scalar_lea.hbm %s1370_s11, 16  ;;  %p1376_p7 = scmp.lt.s32.totalorder %s1370_s11, %s1782_s4 }
 0x1d3   : > { %p1372_p4 = scmp.ne.s32.totalorder %s1370_s11, %s1371_s10  ;;  %p1377_p8 = scmp.lt.s32.totalorder %s1375_s16, %s1371_s10 }
 0x1d5   : > { %p1373_p5 = pnand %p1372_p4, %p1562_p9  ;;  %p1378_p10 = por %p1377_p8, %p1376_p7 }
 0x1d7   : > { %p1374_p6 = pneg %p1373_p5 }
 0x1d9   : > { %p1379_p13 = pnand %p1378_p10, %p1374_p6 }
 0x20a   : > { %v463_v4 = vpop.permute.xlu2 %462 }
 0x20b   : > { %466 = vst.msk [vmem:[#allocation2] sm:$0xff] %vm465_vm5, %v463_v4 }
 0x212   : > { %v665_v6 = vld [vmem:[#allocation2] sm:$0xff] }
 0x213   : > { %v1150_v7 = vmul.f32 -1.442695, %v665_v6 }
 0x215   : > { %1271 = vpow2.f32 %v1150_v7 }
 0x21b   : > { %v1272_v8 = vpop.eup %1271 }
 0x21c   : > { %v685_v9 = vadd.f32 1.0, %v1272_v8 }
 0x21e   : > { %1273 = vrcp.f32 %v685_v9  ;;  %v700_v13 = vand.u32 2147483648, %v685_v9  ;;  %v698_v15 = vand.u32 2147483647, %v685_v9  ;;  %vm694_vm7 = vweird.f32 %v685_v9 }
 0x21f   : > { %1275 = vtanh.f32 %v665_v6 }
 0x220   : > { %v701_v18 = vor.u32 1.1754944e-38, %v700_v13  ;;  %vm699_vm9 = vcmp.eq.f32.partialorder %v698_v15, 8.507059e+37 }
 0x224   : > { %v1274_v10 = vpop.eup %1273 }
 0x225   : > { %v690_v11 = vmul.f32 %v1274_v10, %v685_v9  ;;  %vm695_vm6 = vweird.f32 %v1274_v10  ;;  %v1276_v23 = vpop.eup %1275 }
 0x226   : > { %vm696_vm8 = vmor %vm694_vm7, %vm695_vm6 }
 0x227   : > { %v691_v12 = vsub.f32 1.0, %v690_v11 }
 0x229   : > { %v692_v14 = vmul.f32 %v1274_v10, %v691_v12 }
 0x22a   : > { %v596_v16 = vpop.permute.xlu0 %595 }
 0x22b   : > { %598 = vst.msk [vmem:[#allocation2 + $0x10] sm:$0xff] %vm465_vm5, %v596_v16  ;;  %v693_v17 = vadd.f32 %v1274_v10, %v692_v14 }
 0x22d   : > { %v697_v19 = vsel %vm696_vm8, %v1274_v10, %v693_v17 }
 0x22e   : > { %v702_v20 = vsel %vm699_vm9, %v701_v18, %v697_v19 }
 0x22f   : > { %v662_v21 = vpop.permute.xlu1 %661  ;;  %v753_v22 = vrot.slane %v702_v20, 4 }
 0x230   : > { %664 = vst.msk [vmem:[#allocation2 + $0x18] sm:$0xff] %vm465_vm5, %v662_v21 }
 0x231   : > { %v761_v24 = vmul.f32 %v1276_v23, %v753_v22 }
 0x232   : > { %v530_v25 = vpop.permute.xlu0 %529  ;;  %v667_v26 = vld [vmem:[#allocation2 + $0x10] sm:$0xff] }
 0x233   : > { %532 = vst.msk [vmem:[#allocation2 + $0x8] sm:$0xff] %vm465_vm5, %v530_v25  ;;  %1154 = vmatpush.msk.msra.mxu0 %vm394_vm1, %v761_v24  ;;  %v1152_v27 = vmul.f32 -1.442695, %v667_v26  ;;  %v881_v25 = vpop.permute.xlu2 %880 }
 0x234   : > { %1155 = vmatmul.msk.f32.vlgmr.msra.gmra.mxu0 %vm772_vm10, %v1687_v28 }
 0x235   : > { %1277 = vpow2.f32 %v1152_v27 }
 0x237   : > { %v668_v29 = vld [vmem:[#allocation2 + $0x18] sm:$0xff]  ;;  %v770_v21 = vpop.permute.xlu1 %769 }
 0x238   : > { %v1153_v30 = vmul.f32 -1.442695, %v668_v29 }
 0x23a   : > { %1279 = vpow2.f32 %v1153_v30  ;;  %v1691_v31 = vld [vmem:[#allocation2 + $0x8] sm:$0xff]  ;;  %v883_v24 = vpop.permute.xlu0 %882 }
 0x23b   : > { %v1278_v32 = vpop.eup %1277  ;;  %v1151_v33 = vmul.f32 -1.442695, %v1691_v31 }
 0x23c   : > { %v687_v34 = vadd.f32 1.0, %v1278_v32 }
 0x23d   : > { %1281 = vpow2.f32 %v1151_v33  ;;  %v889_v33 = vsel %vm360_vm0, %v881_v25, %v883_v24 }
 0x23e   : > { %1283 = vrcp.f32 %v687_v34  ;;  %v730_v49 = vand.u32 2147483648, %v687_v34  ;;  %v728_v52 = vand.u32 2147483647, %v687_v34  ;;  %vm724_vm12 = vweird.f32 %v687_v34 }
 0x240   : > { %v1280_v39 = vpop.eup %1279  ;;  %v731_v56 = vor.u32 1.1754944e-38, %v730_v49  ;;  %vm729_vm14 = vcmp.eq.f32.partialorder %v728_v52, 8.507059e+37 }
 0x241   : > { %v688_v40 = vadd.f32 1.0, %v1280_v39 }
 0x243   : > { %v1282_v42 = vpop.eup %1281  ;;  %1285 = vrcp.f32 %v688_v40  ;;  %v745_v58 = vand.u32 2147483648, %v688_v40  ;;  %v743_v63 = vand.u32 2147483647, %v688_v40  ;;  %vm739_vm2 = vweird.f32 %v688_v40 }
 0x244   : > { %v1284_v44 = vpop.eup %1283  ;;  %v686_v45 = vadd.f32 1.0, %v1282_v42 }
 0x245   : > { %v720_v47 = vmul.f32 %v1284_v44, %v687_v34  ;;  %vm725_vm11 = vweird.f32 %v1284_v44  ;;  %v746_v4 = vor.u32 1.1754944e-38, %v745_v58  ;;  %vm744_vm5 = vcmp.eq.f32.partialorder %v743_v63, 8.507059e+37  ;;  %v885_v34 = vpop.permute.xlu1 %884 }
 0x246   : > { %1287 = vrcp.f32 %v686_v45  ;;  %vm726_vm13 = vmor %vm724_vm12, %vm725_vm11  ;;  %v715_v5 = vand.u32 2147483648, %v686_v45  ;;  %v713_v8 = vand.u32 2147483647, %v686_v45  ;;  %vm709_vm6 = vweird.f32 %v686_v45 }
 0x247   : > { %v721_v48 = vsub.f32 1.0, %v720_v47  ;;  %1289 = vtanh.f32 %v667_v26 }
 0x248   : > { %1291 = vtanh.f32 %v668_v29  ;;  %v716_v13 = vor.u32 1.1754944e-38, %v715_v5  ;;  %vm714_vm8 = vcmp.eq.f32.partialorder %v713_v8, 8.507059e+37  ;;  %v879_v29 = vpop.permute.xlu0 %878 }
 0x249   : > { %v1286_v50 = vpop.eup %1285  ;;  %v722_v51 = vmul.f32 %v1284_v44, %v721_v48  ;;  %1293 = vtanh.f32 %v1691_v31  ;;  %v887_v31 = vpop.permute.xlu2 %886 }
 0x24a   : > { %v735_v53 = vmul.f32 %v1286_v50, %v688_v40  ;;  %vm740_vm15 = vweird.f32 %v1286_v50  ;;  %v891_v37 = vsel %vm360_vm0, %v885_v34, %v887_v31  ;;  %v890_v40 = vsel %vm360_vm0, %v883_v24, %v885_v34 }
 0x24b   : > { %v723_v54 = vadd.f32 %v1284_v44, %v722_v51  ;;  %vm741_vm3 = vmor %vm739_vm2, %vm740_vm15 }
 0x24c   : > { %v1288_v55 = vpop.eup %1287  ;;  %v736_v57 = vsub.f32 1.0, %v735_v53 }
 0x24d   : > { %v727_v59 = vsel %vm726_vm13, %v1284_v44, %v723_v54  ;;  %v705_v60 = vmul.f32 %v1288_v55, %v686_v45  ;;  %v1290_v2 = vpop.eup %1289  ;;  %vm710_vm4 = vweird.f32 %v1288_v55 }
 0x24e   : > { %v732_v61 = vsel %vm729_vm14, %v731_v56, %v727_v59  ;;  %v737_v62 = vmul.f32 %v1286_v50, %v736_v57  ;;  %vm711_vm7 = vmor %vm709_vm6, %vm710_vm4  ;;  %v1292_v14 = vpop.eup %1291 }
 0x24f   : > { %v755_v0 = vrot.slane %v732_v61, 4  ;;  %v706_v1 = vsub.f32 1.0, %v705_v60  ;;  %v1294_v19 = vpop.eup %1293 }
 0x250   : > { %v738_v3 = vadd.f32 %v1286_v50, %v737_v62 }
 0x251   : > { %v763_v6 = vmul.f32 %v1290_v2, %v755_v0  ;;  %v707_v7 = vmul.f32 %v1288_v55, %v706_v1 }
 0x252   : > { %v742_v9 = vsel %vm741_vm3, %v1286_v50, %v738_v3 }
 0x253   : > { %1158 = vmatpush.msk.msra.mxu2 %vm394_vm1, %v763_v6  ;;  %v747_v10 = vsel %vm744_vm5, %v746_v4, %v742_v9  ;;  %v708_v11 = vadd.f32 %v1288_v55, %v707_v7 }
 0x254   : > { %v756_v12 = vrot.slane %v747_v10, 4  ;;  %1159 = vmatmul.msk.f32.vlgmr.msra.gmra.mxu2 %vm772_vm10, %v1687_v28 }
 0x255   : > { %v712_v15 = vsel %vm711_vm7, %v1288_v55, %v708_v11 }
 0x256   : > { %v764_v16 = vmul.f32 %v1292_v14, %v756_v12  ;;  %v717_v17 = vsel %vm714_vm8, %v716_v13, %v712_v15 }
 0x257   : > { %v754_v18 = vrot.slane %v717_v17, 4 }
 0x258   : > { %1160 = vmatpush.msk.msra.mxu3 %vm394_vm1, %v764_v16 }
 0x259   : > { %1161 = vmatmul.msk.f32.vlgmr.msra.gmra.mxu3 %vm772_vm10, %v1687_v28  ;;  %v762_v20 = vmul.f32 %v1294_v19, %v754_v18 }
 0x25b   : > { %1156 = vmatpush.msk.msra.mxu1 %vm394_vm1, %v762_v20 }
 0x25c   : > { %1157 = vmatmul.msk.f32.vlgmr.msra.gmra.mxu1 %vm772_vm10, %v1687_v28  ;;  %v888_v28 = vsel %vm360_vm0, %v879_v29, %v881_v25 }
 0x2b1   : > { %v805_v22 = vpop.f32.mrf.mxu0 }
 0x2b2   : > { %v806_v23 = vadd.f32 %v805_v22, %v770_v21 }
 0x2b4   : > { %916 = vst.sshfl [vmem:[#allocation1] sm:$0xff pattern:$0x75316420] %v806_v23  ;;  %v896_v41 = vadd.f32 %v888_v28, %v806_v23 }
 0x2d7   : > { %v845_v26 = vpop.f32.mrf.mxu2 }
 0x2d8   : > { %v846_v27 = vadd.f32 %v845_v26, %v770_v21 }
 0x2d9   : > { %v825_v30 = vpop.f32.mrf.mxu1 }
 0x2da   : > { %v826_v32 = vadd.f32 %v825_v30, %v770_v21  ;;  %918 = vst.sshfl [vmem:[#allocation1 + $0x10] sm:$0xff pattern:$0x75316420] %v846_v27  ;;  %v898_v45 = vadd.f32 %v890_v40, %v846_v27 }
 0x2dc   : > { %v897_v35 = vadd.f32 %v889_v33, %v826_v32  ;;  %917 = vst.sshfl [vmem:[#allocation1 + $0x8] sm:$0xff pattern:$0x75316420] %v826_v32  ;;  %v865_v36 = vpop.f32.mrf.mxu3 }
 0x2dd   : > { %v866_v38 = vadd.f32 %v865_v36, %v770_v21 }
 0x2de   : > { %v904_v39 = vrot.slane %v897_v35, 4 }
 0x2df   : > { %919 = vst.sshfl [vmem:[#allocation1 + $0x18] sm:$0xff pattern:$0x75316420] %v866_v38  ;;  %v899_v42 = vadd.f32 %v891_v37, %v866_v38 }
 0x2e0   : > { %v906_v43 = vsel %vm394_vm1, %v896_v41, %v904_v39 }
 0x2e1   : > { %v905_v44 = vrot.slane %v899_v42, 4  ;;  %910 = vst [vmem:[%s312_s9] sm:$0xff] %v906_v43 }
 0x2e3   : > { %v907_v46 = vsel %vm394_vm1, %v898_v45, %v905_v44  ;;  %v921_v47 = vld [vmem:[#allocation1 + $0x1] ss:$2 sm:$0xff] }
 0x2e4   : > { %911 = vst [vmem:[%s312_s9 + $0x8] sm:$0xff] %v907_v46 }
 0x2e5   : > { %1382 = shalt.err (!%p1379_p13)
}
 0x2e6   : > { %1180 = dma.vmem_to_hbm [thread:$0]  (%p1562_p9), %s950_s12, 256, %s952_s30, %s929_s13   ;;  %926 = vst [vmem:[%s319_s27] sm:$0xff] %v921_v47  ;;  %v923_v48 = vld [vmem:[#allocation1 + $0x11] ss:$2 sm:$0xff] }
 0x2e7   : > { %927 = vst [vmem:[%s319_s27 + $0x8] sm:$0xff] %v923_v48  ;;  %s934_s21 = scalar_lea.sflag [#allocation10], %s1603_s17  ;;  %s1397_s25 = sshra.s32 %s1728_s29, 4  ;;  %s1398_s25 = int_to_ptr.hbm [resolvable:$true] %s1397_s25 }
 0x2e8   : > { %s1399_s7 = scalar_lea.hbm %s1398_s25, 16  ;;  %s1403_s10 = scalar_lea.hbm %s1783_s5, 32 }
 0x2e9   : > { %p1400_p0 = scmp.ne.s32.totalorder %s1398_s25, %s1399_s7  ;;  %p1404_p3 = scmp.lt.s32.totalorder %s1398_s25, %s1783_s5 }
 0x2ea   : > { %p1405_p4 = scmp.lt.s32.totalorder %s1403_s10, %s1399_s7 }
 0x2eb   : > { %p1401_p1 = pnand %p1400_p0, %p1562_p9 }
 0x2ec   : > { %p1406_p5 = por %p1405_p4, %p1404_p3 }
 0x2ed   : > { %p1402_p2 = pneg %p1401_p1 }
 0x2ef   : > { %p1407_p6 = pnand %p1406_p5, %p1402_p2 }
 0x2f1   : > { %1410 = shalt.err (!%p1407_p6)
}
 0x2f2   : > { %1181 = dma.vmem_to_hbm [thread:$0]  (%p1562_p9), %s1726_s28, 256, %s1728_s29, %s934_s21  }
 0x2f3 PF: > { %s980_s17 = sand.u32 1, %s1453_s18   ;;  %p1192_p7 = pnand %p1118_p12, %p1569_p11 }
 0x2f4   : > { %s981_s12 = scalar_lea.sflag [#allocation5], %s980_s17 }
 0x2f5   : > { %p1193_p8 = pneg %p1192_p7 }
 0x2f7   : > { %1444 = dma.done.wait (%p1193_p8), %s981_s12, 256  }
 0x2f8   : > { %1446 = vsyncadd (%p1193_p8), %s981_s12, 4294967040  ;;  %s991_s30 = scalar_lea.sflag [#allocation10], %s980_s17 }
 0x2f9   : > { %1448 = dma.done.wait (%p1193_p8), %s991_s30, 256  }
 0x2fa   : > { %1450 = vsyncadd (%p1193_p8), %s991_s30, 4294967040  ;;  %s28_s23 = sadd.s32 1, %s1473_s23   ;;  %s1792_s6 = sld [smem:[#allocation16_spill]] }
 0x2fb   : > { %p25_p10 = scmp.ge.s32.totalorder %s28_s23, 4   ;;  %s1793_s27 = sld [smem:[#allocation15_spill]] }
 0x2fc   : > { %s1794_s18 = smov %s1457_s19  ;;  %s1795_s19 = smov %s1461_s20 }
 0x2fd   : > { %s1797_s21 = smov %s1469_s22  ;;  %27 = sbr.rel (!%p25_p10) target bundleno = 10 (0xa), region = 128 }
 0x300   : > { %s1796_s20 = smov %s1792_s6 }
 0x301   : > { %s1798_s22 = smov %s1793_s27 }
 0x302   :  { %997 = vsyncpa [#allocation4], 1 }
 0x303   :  { %999 = vsyncpa [#allocation4 + $0x1], 1 }
 0x304   :  { %1000 = vsyncpa [#allocation7], 1 }
 0x305   :  { %1002 = vsyncpa [#allocation7 + $0x1], 1 }
 0x306   :  { %1003 = vsyncpa [#allocation5], 1 }
 0x307   :  { %1005 = vsyncpa [#allocation5 + $0x1], 1 }
 0x308   :  { %1006 = vsyncpa [#allocation10], 1 }
 0x309   :  { %1008 = vsyncpa [#allocation10 + $0x1], 1 }

</bundles_post_ra>
